<compile_context>
chip_gen: v7x
topology: tpu7x:2x2x1
jax: 0.10.0
libtpu: 0.0.40
codegen_flags: <defaults>
</compile_context>

<pallas_src>
import functools

import jax
import jax.numpy as jnp
from jax import lax
from jax.experimental import pallas as pl
from jax.experimental.pallas import tpu as pltpu


def _siglip_attn_kernel(scale, head_dim, group_size, compute_dtype,
                        return_attn, acc_in_out,
                        x_ref, wqkv_ref, bqkv_ref, wo_ref, bo_ref,
                        *out_and_scratch):
    outs = list(out_and_scratch)
    out_ref = outs.pop(0)
    attn_ref = outs.pop(0) if return_attn else None
    acc_ref = None if acc_in_out else outs.pop(0)

    g = pl.program_id(1)
    num_groups = pl.num_programs(1)
    D = head_dim
    GD = group_size * D

    # Blocks are delivered already in compute_dtype (cast done in the wrapper).
    x = x_ref[0]                                   # (S, E)
    wqkv = wqkv_ref[0]                             # (E, 3*G*D)

    # Fused Q/K/V projection for this head group: one wide-N MXU matmul,
    # f32 accumulation, f32 bias add.
    qkv = jnp.dot(x, wqkv, preferred_element_type=jnp.float32) + bqkv_ref[0]

    approx = compute_dtype != jnp.float32
    ctx_parts = []
    for i in range(group_size):                    # static unroll over heads in group
        q = qkv[:, i * D:(i + 1) * D]              # (S, D)
        k = qkv[:, GD + i * D:GD + (i + 1) * D]    # (S, D)
        v = qkv[:, 2 * GD + i * D:2 * GD + (i + 1) * D]

        # scores = (Q K^T) * scale as a last-dim contraction (no XLU transpose).
        scores = lax.dot_general(
            q.astype(compute_dtype), k.astype(compute_dtype),
            dimension_numbers=(((1,), (1,)), ((), ())),
            preferred_element_type=jnp.float32) * scale          # (S, S)

        # Numerically-stable softmax in f32.
        scores = scores - jnp.max(scores, axis=-1, keepdims=True)
        e = jnp.exp(scores)
        denom = jnp.sum(e, axis=-1, keepdims=True)
        # Exact divide on the f32 path; EUP approx reciprocal on the fast path.
        attn = e * pl.reciprocal(denom, approx=approx)           # (S, S)

        if attn_ref is not None:
            attn_ref[0, i] = attn.astype(attn_ref.dtype)

        ctx_parts.append(jnp.dot(attn.astype(compute_dtype),
                                 v.astype(compute_dtype),
                                 preferred_element_type=jnp.float32))  # (S, D)

    # Group context (S, G*D) -> single output-projection matmul with K = G*D.
    ctx = ctx_parts[0] if group_size == 1 else jnp.concatenate(ctx_parts, axis=-1)
    head_out = jnp.dot(ctx.astype(compute_dtype), wo_ref[0],
                       preferred_element_type=jnp.float32)       # (S, E)

    if acc_in_out:
        # Output dtype is f32: accumulate directly into the resident out block.
        @pl.when(g == 0)
        def _():
            out_ref[0] = (head_out + bo_ref[...]).astype(out_ref.dtype)

        @pl.when(g > 0)
        def _():
            out_ref[0] = out_ref[0] + head_out.astype(out_ref.dtype)
    else:
        @pl.when(g == 0)
        def _():
            acc_ref[...] = head_out + bo_ref[...]

        @pl.when(g > 0)
        def _():
            acc_ref[...] += head_out

        @pl.when(g == num_groups - 1)
        def _():
            out_ref[0] = acc_ref[...].astype(out_ref.dtype)


def pack_siglip_attention_params(params, num_heads, *, group_size=None,
                                 compute_dtype=jnp.float32):
    """One-time parameter packing (do this at init, NOT per forward call).

    Packs wq/wk/wv into a fused (H/G, E, 3*G*D) tensor, wo into (H/G, G*D, E),
    and casts the matmul operands to compute_dtype (biases stay f32).
    """
    E = params["wq"].shape[0]
    assert E % num_heads == 0
    D = E // num_heads

    if group_size is None:
        # Largest divisor of num_heads keeping the grouped head width within
        # one 256-wide MXU tile (v6e/v7x).
        group_size = 1
        for g in range(1, num_heads + 1):
            if num_heads % g == 0 and g * D <= 256:
                group_size = g
    G = group_size
    assert num_heads % G == 0
    NG = num_heads // G

    def pack_w(w):          # (E, E) -> (NG, E, G*D), heads contiguous in lanes
        return jnp.asarray(w).reshape(E, NG, G * D).transpose(1, 0, 2)

    def pack_b(b):          # (1, E) -> (NG, 1, G*D)
        return jnp.asarray(b).reshape(NG, 1, G * D)

    wqkv = jnp.concatenate(
        [pack_w(params["wq"]), pack_w(params["wk"]), pack_w(params["wv"])],
        axis=-1).astype(compute_dtype)                            # (NG, E, 3*G*D)
    bqkv = jnp.concatenate(
        [pack_b(params["bq"]), pack_b(params["bk"]), pack_b(params["bv"])],
        axis=-1).astype(jnp.float32)                              # (NG, 1, 3*G*D)
    wo = jnp.asarray(params["wo"]).reshape(NG, G * D, E).astype(compute_dtype)
    bo = jnp.asarray(params["bo"]).reshape(1, E).astype(jnp.float32)

    return {"wqkv": wqkv, "bqkv": bqkv, "wo": wo, "bo": bo,
            "num_heads": num_heads, "head_dim": D, "group_size": G}


def siglip_attention(x, packed, *, return_attn_weights=True,
                     attn_weights_dtype=None):
    """SiglipAttention forward.

    x: (B, S, E).  packed: result of pack_siglip_attention_params.
    Returns (attn_output, attn_weights | None).
    """
    B, S, E = x.shape
    H = packed["num_heads"]
    D = packed["head_dim"]
    G = packed["group_size"]
    NG = H // G
    GD = G * D
    scale = D ** (-0.5)

    compute_dtype = packed["wqkv"].dtype
    x_in = x.astype(compute_dtype)        # cast once in the wrapper (halves DMA on bf16)
    wqkv, bqkv, wo, bo = packed["wqkv"], packed["bqkv"], packed["wo"], packed["bo"]

    attn_dtype = x.dtype if attn_weights_dtype is None else attn_weights_dtype
    acc_in_out = (x.dtype == jnp.float32)

    kernel = functools.partial(_siglip_attn_kernel, scale, D, G, compute_dtype,
                               return_attn_weights, acc_in_out)

    in_specs = [
        pl.BlockSpec((1, S, E), lambda b, g: (b, 0, 0)),        # x (constant over g)
        pl.BlockSpec((1, E, 3 * GD), lambda b, g: (g, 0, 0)),   # fused qkv weights
        pl.BlockSpec((1, 1, 3 * GD), lambda b, g: (g, 0, 0)),   # fused qkv bias
        pl.BlockSpec((1, GD, E), lambda b, g: (g, 0, 0)),       # out-proj rows (group g)
        pl.BlockSpec((1, E), lambda b, g: (0, 0)),              # out-proj bias
    ]

    out_spec = pl.BlockSpec((1, S, E), lambda b, g: (b, 0, 0))  # resident over g
    out_shape = jax.ShapeDtypeStruct((B, S, E), x.dtype)
    if return_attn_weights:
        out_specs = (out_spec,
                     pl.BlockSpec((1, G, S, S), lambda b, g: (b, g, 0, 0)))
        out_shapes = (out_shape,
                      jax.ShapeDtypeStruct((B, H, S, S), attn_dtype))
    else:
        out_specs = out_spec
        out_shapes = out_shape

    scratch_shapes = [] if acc_in_out else [pltpu.VMEM((S, E), jnp.float32)]

    # VMEM budget: double-buffered blocks + scratch (no extra 2x double-count),
    # capped at 85% of this generation's physical VMEM.
    cd_b = jnp.dtype(compute_dtype).itemsize
    out_b = jnp.dtype(x.dtype).itemsize
    attn_b = jnp.dtype(attn_dtype).itemsize
    block_bytes = (
        2 * S * E * cd_b                                    # x
        + 2 * E * 3 * GD * cd_b                             # wqkv
        + 2 * 3 * GD * 4                                    # bqkv (f32)
        + 2 * GD * E * cd_b                                 # wo
        + 2 * E * 4                                         # bo
        + 2 * S * E * out_b                                 # out
        + (2 * G * S * S * attn_b if return_attn_weights else 0)
        + (0 if acc_in_out else S * E * 4)                  # accumulator scratch
    )
    try:
        vmem_cap = pltpu.get_tpu_info().vmem_capacity_bytes
    except Exception:
        vmem_cap = 64 * 1024 * 1024
    vmem_limit = min(max(int(1.25 * block_bytes), 16 * 1024 * 1024),
                     int(0.85 * vmem_cap))

    result = pl.pallas_call(
        kernel,
        out_shape=out_shapes,
        grid_spec=pltpu.PrefetchScalarGridSpec(
            num_scalar_prefetch=0,
            grid=(B, NG),                       # head-group (reduction) axis innermost
            in_specs=in_specs,
            out_specs=out_specs,
            scratch_shapes=scratch_shapes,
        ),
        compiler_params=pltpu.CompilerParams(
            dimension_semantics=("parallel", "arbitrary"),
            vmem_limit_bytes=vmem_limit),
    )(x_in, wqkv, bqkv, wo, bo)

    if return_attn_weights:
        return result
    return result, None


def _reference(x, params, num_heads):
    """Plain-JAX reference mirroring the PyTorch forward."""
    B, S, E = x.shape
    D = E // num_heads
    scale = D ** (-0.5)

    def proj(w, b):
        return x @ w + b[0]

    q = proj(params["wq"], params["bq"]).reshape(B, S, num_heads, D).transpose(0, 2, 1, 3)
    k = proj(params["wk"], params["bk"]).reshape(B, S, num_heads, D).transpose(0, 2, 1, 3)
    v = proj(params["wv"], params["bv"]).reshape(B, S, num_heads, D).transpose(0, 2, 1, 3)

    scores = jnp.einsum("bhqd,bhkd->bhqk", q, k) * scale
    attn = jax.nn.softmax(scores.astype(jnp.float32), axis=-1).astype(x.dtype)
    ctx = jnp.einsum("bhqk,bhkd->bhqd", attn, v)
    ctx = ctx.transpose(0, 2, 1, 3).reshape(B, S, E)
    out = ctx @ params["wo"] + params["bo"][0]
    return out, attn


if __name__ == "__main__":
    # Small config consistent with SiglipVisionConfig semantics.
    batch, seq, embed_dim, num_heads = 2, 8, 32, 4

    key = jax.random.PRNGKey(0)
    keys = jax.random.split(key, 9)
    init = lambda k, shape: (jax.random.normal(k, shape, jnp.float32) * 0.05)

    params = {
        "wq": init(keys[0], (embed_dim, embed_dim)),
        "bq": init(keys[1], (1, embed_dim)),
        "wk": init(keys[2], (embed_dim, embed_dim)),
        "bk": init(keys[3], (1, embed_dim)),
        "wv": init(keys[4], (embed_dim, embed_dim)),
        "bv": init(keys[5], (1, embed_dim)),
        "wo": init(keys[6], (embed_dim, embed_dim)),
        "bo": init(keys[7], (1, embed_dim)),
    }
    x = jax.random.normal(keys[8], (batch, seq, embed_dim), jnp.float32)

    ref_out, ref_attn = _reference(x, params, num_heads)

    # 1) Reference precision, auto head-grouping (all heads in one group here),
    #    attention weights returned -- matches PyTorch module semantics.
    packed_f32 = pack_siglip_attention_params(params, num_heads)
    out, attn = siglip_attention(x, packed_f32)
    out, attn = jax.block_until_ready((out, attn))
    assert jnp.allclose(out, ref_out, atol=1e-5, rtol=1e-5), "output mismatch (auto group)"
    assert jnp.allclose(attn, ref_attn, atol=1e-5, rtol=1e-5), "attn mismatch (auto group)"

    # 2) Reference precision, explicit group_size=2 -- exercises the multi-group
    #    accumulation path (out_ref resident across the head-group axis).
    packed_g2 = pack_siglip_attention_params(params, num_heads, group_size=2)
    out2, attn2 = siglip_attention(x, packed_g2)
    out2, attn2 = jax.block_until_ready((out2, attn2))
    assert jnp.allclose(out2, ref_out, atol=1e-5, rtol=1e-5), "output mismatch (G=2)"
    assert jnp.allclose(attn2, ref_attn, atol=1e-5, rtol=1e-5), "attn mismatch (G=2)"

    # 3) Fast path: bf16 MXU operands / f32 accumulation, bf16 HBM weight+x DMA,
    #    attention-weights output skipped (flash-style memory profile).
    packed_bf16 = pack_siglip_attention_params(params, num_heads, group_size=2,
                                               compute_dtype=jnp.bfloat16)
    out_fast, attn_none = siglip_attention(x, packed_bf16, return_attn_weights=False)
    out_fast = jax.block_until_ready(out_fast)
    assert attn_none is None
    assert jnp.allclose(out_fast, ref_out, atol=5e-2, rtol=5e-2), \
        "bf16 fast-path output mismatch"

    print("KERNEL_OK")
</pallas_src>

<mosaic_0001>
module attributes {stable_mosaic.version = 11 : i64} {
  func.func @_siglip_attn_kernel(%arg0: i32, %arg1: i32, %arg2: memref<1x8x32xf32, #tpu.memory_space<vmem>>, %arg3: memref<1x32x96xf32, #tpu.memory_space<vmem>>, %arg4: memref<1x1x96xf32, #tpu.memory_space<vmem>>, %arg5: memref<1x32x32xf32, #tpu.memory_space<vmem>>, %arg6: memref<1x32xf32, #tpu.memory_space<vmem>>, %arg7: memref<1x8x32xf32, #tpu.memory_space<vmem>>, %arg8: memref<1x4x8x8xf32, #tpu.memory_space<vmem>>) attributes {dimension_semantics = [#tpu.dimension_semantics<parallel>, #tpu.dimension_semantics<arbitrary>], iteration_bounds = array<i64: 2, 1>, scalar_prefetch = 0 : i64, scratch_operands = 0 : i64, tpu.core_type = #tpu.core_type<tc>, window_params = [{transform_indices = @transform_0, window_bounds = array<i64: 1, 8, 32>}, {transform_indices = @transform_1, window_bounds = array<i64: 1, 32, 96>}, {transform_indices = @transform_2, window_bounds = array<i64: 1, 1, 96>}, {transform_indices = @transform_3, window_bounds = array<i64: 1, 32, 32>}, {pipeline_mode = #tpu.pipeline_mode<synchronous>, transform_indices = @transform_4, window_bounds = array<i64: 1, 32>}, {transform_indices = @transform_5, window_bounds = array<i64: 1, 8, 32>}, {transform_indices = @transform_6, window_bounds = array<i64: 1, 4, 8, 8>}]} {
    %c0 = arith.constant 0 : index
    %c0_0 = arith.constant 0 : index
    %c0_1 = arith.constant 0 : index
    %0 = vector.load %arg2[%c0, %c0_0, %c0_1] : memref<1x8x32xf32, #tpu.memory_space<vmem>>, vector<1x8x32xf32>
    %1 = vector.shape_cast %0 : vector<1x8x32xf32> to vector<8x32xf32>
    %c0_2 = arith.constant 0 : index
    %c0_3 = arith.constant 0 : index
    %c0_4 = arith.constant 0 : index
    %2 = vector.load %arg3[%c0_2, %c0_3, %c0_4] : memref<1x32x96xf32, #tpu.memory_space<vmem>>, vector<1x32x96xf32>
    %3 = vector.shape_cast %2 : vector<1x32x96xf32> to vector<32x96xf32>
    %cst = arith.constant dense<0.000000e+00> : vector<8x96xf32>
    %4 = tpu.matmul %1, %3, %cst {dimension_numbers = #tpu.dot_dimension_numbers<[1], [0], [0], [1], [0, 0, 1, 1], [], []>} : vector<8x32xf32>, vector<32x96xf32>, vector<8x96xf32> -> vector<8x96xf32>
    %c0_5 = arith.constant 0 : index
    %c0_6 = arith.constant 0 : index
    %c0_7 = arith.constant 0 : index
    %5 = vector.load %arg4[%c0_5, %c0_6, %c0_7] : memref<1x1x96xf32, #tpu.memory_space<vmem>>, vector<1x1x96xf32>
    %6 = vector.shape_cast %5 : vector<1x1x96xf32> to vector<1x96xf32>
    %7 = vector.broadcast %6 : vector<1x96xf32> to vector<8x96xf32>
    %8 = arith.addf %4, %7 : vector<8x96xf32>
    %9 = vector.extract_strided_slice %8 {offsets = [0, 0], sizes = [8, 8], strides = [1, 1]} : vector<8x96xf32> to vector<8x8xf32>
    %10 = vector.extract_strided_slice %8 {offsets = [0, 32], sizes = [8, 8], strides = [1, 1]} : vector<8x96xf32> to vector<8x8xf32>
    %11 = vector.extract_strided_slice %8 {offsets = [0, 64], sizes = [8, 8], strides = [1, 1]} : vector<8x96xf32> to vector<8x8xf32>
    %cst_8 = arith.constant dense<0.000000e+00> : vector<8x8xf32>
    %12 = tpu.matmul %9, %10, %cst_8 {dimension_numbers = #tpu.dot_dimension_numbers<[1], [1], [0], [0], [0, 0, 1, 0], [], []>} : vector<8x8xf32>, vector<8x8xf32>, vector<8x8xf32> -> vector<8x8xf32>
    %cst_9 = arith.constant 0.353553385 : f32
    %13 = vector.broadcast %cst_9 : f32 to vector<8x8xf32>
    %14 = arith.mulf %12, %13 : vector<8x8xf32>
    %cst_10 = arith.constant dense<0xFF800000> : vector<8xf32>
    %15 = vector.multi_reduction <maximumf>, %14, %cst_10 [1] : vector<8x8xf32> to vector<8xf32>
    %16 = vector.shape_cast %15 : vector<8xf32> to vector<8x1xf32>
    %17 = vector.broadcast %16 : vector<8x1xf32> to vector<8x8xf32>
    %18 = arith.subf %14, %17 : vector<8x8xf32>
    %19 = math.exp %18 : vector<8x8xf32>
    %cst_11 = arith.constant dense<0.000000e+00> : vector<8xf32>
    %20 = vector.multi_reduction <add>, %19, %cst_11 [1] : vector<8x8xf32> to vector<8xf32>
    %21 = vector.shape_cast %20 : vector<8xf32> to vector<8x1xf32>
    %22 = tpu.reciprocal %21 : vector<8x1xf32> -> vector<8x1xf32>
    %23 = vector.broadcast %22 : vector<8x1xf32> to vector<8x8xf32>
    %24 = arith.mulf %19, %23 : vector<8x8xf32>
    %c0_12 = arith.constant 0 : index
    %c0_13 = arith.constant 0 : index
    %c0_14 = arith.constant 0 : index
    %c0_15 = arith.constant 0 : index
    %25 = vector.load %arg8[%c0_12, %c0_13, %c0_14, %c0_15] : memref<1x4x8x8xf32, #tpu.memory_space<vmem>>, vector<1x1x8x8xf32>
    %26 = vector.shape_cast %25 : vector<1x1x8x8xf32> to vector<8x8xf32>
    %27 = vector.shape_cast %24 : vector<8x8xf32> to vector<1x1x8x8xf32>
    tpu.vector_store %arg8[%c0_12, %c0_13, %c0_14, %c0_15], %27 {strides = array<i32>} : memref<1x4x8x8xf32, #tpu.memory_space<vmem>>, vector<1x1x8x8xf32>,
    %cst_16 = arith.constant dense<0.000000e+00> : vector<8x8xf32>
    %28 = tpu.matmul %24, %11, %cst_16 {dimension_numbers = #tpu.dot_dimension_numbers<[1], [0], [0], [1], [0, 0, 1, 1], [], []>} : vector<8x8xf32>, vector<8x8xf32>, vector<8x8xf32> -> vector<8x8xf32>
    %29 = vector.extract_strided_slice %8 {offsets = [0, 8], sizes = [8, 8], strides = [1, 1]} : vector<8x96xf32> to vector<8x8xf32>
    %30 = vector.extract_strided_slice %8 {offsets = [0, 40], sizes = [8, 8], strides = [1, 1]} : vector<8x96xf32> to vector<8x8xf32>
    %31 = vector.extract_strided_slice %8 {offsets = [0, 72], sizes = [8, 8], strides = [1, 1]} : vector<8x96xf32> to vector<8x8xf32>
    %cst_17 = arith.constant dense<0.000000e+00> : vector<8x8xf32>
    %32 = tpu.matmul %29, %30, %cst_17 {dimension_numbers = #tpu.dot_dimension_numbers<[1], [1], [0], [0], [0, 0, 1, 0], [], []>} : vector<8x8xf32>, vector<8x8xf32>, vector<8x8xf32> -> vector<8x8xf32>
    %cst_18 = arith.constant 0.353553385 : f32
    %33 = vector.broadcast %cst_18 : f32 to vector<8x8xf32>
    %34 = arith.mulf %32, %33 : vector<8x8xf32>
    %cst_19 = arith.constant dense<0xFF800000> : vector<8xf32>
    %35 = vector.multi_reduction <maximumf>, %34, %cst_19 [1] : vector<8x8xf32> to vector<8xf32>
    %36 = vector.shape_cast %35 : vector<8xf32> to vector<8x1xf32>
    %37 = vector.broadcast %36 : vector<8x1xf32> to vector<8x8xf32>
    %38 = arith.subf %34, %37 : vector<8x8xf32>
    %39 = math.exp %38 : vector<8x8xf32>
    %cst_20 = arith.constant dense<0.000000e+00> : vector<8xf32>
    %40 = vector.multi_reduction <add>, %39, %cst_20 [1] : vector<8x8xf32> to vector<8xf32>
    %41 = vector.shape_cast %40 : vector<8xf32> to vector<8x1xf32>
    %42 = tpu.reciprocal %41 : vector<8x1xf32> -> vector<8x1xf32>
    %43 = vector.broadcast %42 : vector<8x1xf32> to vector<8x8xf32>
    %44 = arith.mulf %39, %43 : vector<8x8xf32>
    %c0_21 = arith.constant 0 : index
    %c1 = arith.constant 1 : index
    %c0_22 = arith.constant 0 : index
    %c0_23 = arith.constant 0 : index
    %45 = vector.load %arg8[%c0_21, %c1, %c0_22, %c0_23] : memref<1x4x8x8xf32, #tpu.memory_space<vmem>>, vector<1x1x8x8xf32>
    %46 = vector.shape_cast %45 : vector<1x1x8x8xf32> to vector<8x8xf32>
    %47 = vector.shape_cast %44 : vector<8x8xf32> to vector<1x1x8x8xf32>
    tpu.vector_store %arg8[%c0_21, %c1, %c0_22, %c0_23], %47 {strides = array<i32>} : memref<1x4x8x8xf32, #tpu.memory_space<vmem>>, vector<1x1x8x8xf32>,
    %cst_24 = arith.constant dense<0.000000e+00> : vector<8x8xf32>
    %48 = tpu.matmul %44, %31, %cst_24 {dimension_numbers = #tpu.dot_dimension_numbers<[1], [0], [0], [1], [0, 0, 1, 1], [], []>} : vector<8x8xf32>, vector<8x8xf32>, vector<8x8xf32> -> vector<8x8xf32>
    %49 = vector.extract_strided_slice %8 {offsets = [0, 16], sizes = [8, 8], strides = [1, 1]} : vector<8x96xf32> to vector<8x8xf32>
    %50 = vector.extract_strided_slice %8 {offsets = [0, 48], sizes = [8, 8], strides = [1, 1]} : vector<8x96xf32> to vector<8x8xf32>
    %51 = vector.extract_strided_slice %8 {offsets = [0, 80], sizes = [8, 8], strides = [1, 1]} : vector<8x96xf32> to vector<8x8xf32>
    %cst_25 = arith.constant dense<0.000000e+00> : vector<8x8xf32>
    %52 = tpu.matmul %49, %50, %cst_25 {dimension_numbers = #tpu.dot_dimension_numbers<[1], [1], [0], [0], [0, 0, 1, 0], [], []>} : vector<8x8xf32>, vector<8x8xf32>, vector<8x8xf32> -> vector<8x8xf32>
    %cst_26 = arith.constant 0.353553385 : f32
    %53 = vector.broadcast %cst_26 : f32 to vector<8x8xf32>
    %54 = arith.mulf %52, %53 : vector<8x8xf32>
    %cst_27 = arith.constant dense<0xFF800000> : vector<8xf32>
    %55 = vector.multi_reduction <maximumf>, %54, %cst_27 [1] : vector<8x8xf32> to vector<8xf32>
    %56 = vector.shape_cast %55 : vector<8xf32> to vector<8x1xf32>
    %57 = vector.broadcast %56 : vector<8x1xf32> to vector<8x8xf32>
    %58 = arith.subf %54, %57 : vector<8x8xf32>
    %59 = math.exp %58 : vector<8x8xf32>
    %cst_28 = arith.constant dense<0.000000e+00> : vector<8xf32>
    %60 = vector.multi_reduction <add>, %59, %cst_28 [1] : vector<8x8xf32> to vector<8xf32>
    %61 = vector.shape_cast %60 : vector<8xf32> to vector<8x1xf32>
    %62 = tpu.reciprocal %61 : vector<8x1xf32> -> vector<8x1xf32>
    %63 = vector.broadcast %62 : vector<8x1xf32> to vector<8x8xf32>
    %64 = arith.mulf %59, %63 : vector<8x8xf32>
    %c0_29 = arith.constant 0 : index
    %c2 = arith.constant 2 : index
    %c0_30 = arith.constant 0 : index
    %c0_31 = arith.constant 0 : index
    %65 = vector.load %arg8[%c0_29, %c2, %c0_30, %c0_31] : memref<1x4x8x8xf32, #tpu.memory_space<vmem>>, vector<1x1x8x8xf32>
    %66 = vector.shape_cast %65 : vector<1x1x8x8xf32> to vector<8x8xf32>
    %67 = vector.shape_cast %64 : vector<8x8xf32> to vector<1x1x8x8xf32>
    tpu.vector_store %arg8[%c0_29, %c2, %c0_30, %c0_31], %67 {strides = array<i32>} : memref<1x4x8x8xf32, #tpu.memory_space<vmem>>, vector<1x1x8x8xf32>,
    %cst_32 = arith.constant dense<0.000000e+00> : vector<8x8xf32>
    %68 = tpu.matmul %64, %51, %cst_32 {dimension_numbers = #tpu.dot_dimension_numbers<[1], [0], [0], [1], [0, 0, 1, 1], [], []>} : vector<8x8xf32>, vector<8x8xf32>, vector<8x8xf32> -> vector<8x8xf32>
    %69 = vector.extract_strided_slice %8 {offsets = [0, 24], sizes = [8, 8], strides = [1, 1]} : vector<8x96xf32> to vector<8x8xf32>
    %70 = vector.extract_strided_slice %8 {offsets = [0, 56], sizes = [8, 8], strides = [1, 1]} : vector<8x96xf32> to vector<8x8xf32>
    %71 = vector.extract_strided_slice %8 {offsets = [0, 88], sizes = [8, 8], strides = [1, 1]} : vector<8x96xf32> to vector<8x8xf32>
    %cst_33 = arith.constant dense<0.000000e+00> : vector<8x8xf32>
    %72 = tpu.matmul %69, %70, %cst_33 {dimension_numbers = #tpu.dot_dimension_numbers<[1], [1], [0], [0], [0, 0, 1, 0], [], []>} : vector<8x8xf32>, vector<8x8xf32>, vector<8x8xf32> -> vector<8x8xf32>
    %cst_34 = arith.constant 0.353553385 : f32
    %73 = vector.broadcast %cst_34 : f32 to vector<8x8xf32>
    %74 = arith.mulf %72, %73 : vector<8x8xf32>
    %cst_35 = arith.constant dense<0xFF800000> : vector<8xf32>
    %75 = vector.multi_reduction <maximumf>, %74, %cst_35 [1] : vector<8x8xf32> to vector<8xf32>
    %76 = vector.shape_cast %75 : vector<8xf32> to vector<8x1xf32>
    %77 = vector.broadcast %76 : vector<8x1xf32> to vector<8x8xf32>
    %78 = arith.subf %74, %77 : vector<8x8xf32>
    %79 = math.exp %78 : vector<8x8xf32>
    %cst_36 = arith.constant dense<0.000000e+00> : vector<8xf32>
    %80 = vector.multi_reduction <add>, %79, %cst_36 [1] : vector<8x8xf32> to vector<8xf32>
    %81 = vector.shape_cast %80 : vector<8xf32> to vector<8x1xf32>
    %82 = tpu.reciprocal %81 : vector<8x1xf32> -> vector<8x1xf32>
    %83 = vector.broadcast %82 : vector<8x1xf32> to vector<8x8xf32>
    %84 = arith.mulf %79, %83 : vector<8x8xf32>
    %c0_37 = arith.constant 0 : index
    %c3 = arith.constant 3 : index
    %c0_38 = arith.constant 0 : index
    %c0_39 = arith.constant 0 : index
    %85 = vector.load %arg8[%c0_37, %c3, %c0_38, %c0_39] : memref<1x4x8x8xf32, #tpu.memory_space<vmem>>, vector<1x1x8x8xf32>
    %86 = vector.shape_cast %85 : vector<1x1x8x8xf32> to vector<8x8xf32>
    %87 = vector.shape_cast %84 : vector<8x8xf32> to vector<1x1x8x8xf32>
    tpu.vector_store %arg8[%c0_37, %c3, %c0_38, %c0_39], %87 {strides = array<i32>} : memref<1x4x8x8xf32, #tpu.memory_space<vmem>>, vector<1x1x8x8xf32>,
    %cst_40 = arith.constant dense<0.000000e+00> : vector<8x8xf32>
    %88 = tpu.matmul %84, %71, %cst_40 {dimension_numbers = #tpu.dot_dimension_numbers<[1], [0], [0], [1], [0, 0, 1, 1], [], []>} : vector<8x8xf32>, vector<8x8xf32>, vector<8x8xf32> -> vector<8x8xf32>
    %89 = tpu.concatenate %28, %48, %68, %88 in 1 : vector<8x8xf32>, vector<8x8xf32>, vector<8x8xf32>, vector<8x8xf32> -> vector<8x32xf32>
    %c0_41 = arith.constant 0 : index
    %c0_42 = arith.constant 0 : index
    %c0_43 = arith.constant 0 : index
    %90 = vector.load %arg5[%c0_41, %c0_42, %c0_43] : memref<1x32x32xf32, #tpu.memory_space<vmem>>, vector<1x32x32xf32>
    %91 = vector.shape_cast %90 : vector<1x32x32xf32> to vector<32x32xf32>
    %cst_44 = arith.constant dense<0.000000e+00> : vector<8x32xf32>
    %92 = tpu.matmul %89, %91, %cst_44 {dimension_numbers = #tpu.dot_dimension_numbers<[1], [0], [0], [1], [0, 0, 1, 1], [], []>} : vector<8x32xf32>, vector<32x32xf32>, vector<8x32xf32> -> vector<8x32xf32>
    %c0_i32 = arith.constant 0 : i32
    %93 = arith.cmpi eq, %arg1, %c0_i32 : i32
    %94 = arith.extui %93 : i1 to i32
    %c0_i32_45 = arith.constant 0 : i32
    %95 = arith.cmpi ne, %94, %c0_i32_45 : i32
    scf.if %95 {
      %c0_48 = arith.constant 0 : index
      %c0_49 = arith.constant 0 : index
      %99 = vector.load %arg6[%c0_48, %c0_49] : memref<1x32xf32, #tpu.memory_space<vmem>>, vector<1x32xf32>
      %100 = vector.broadcast %99 : vector<1x32xf32> to vector<8x32xf32>
      %101 = arith.addf %92, %100 : vector<8x32xf32>
      %c0_50 = arith.constant 0 : index
      %c0_51 = arith.constant 0 : index
      %c0_52 = arith.constant 0 : index
      %102 = vector.load %arg7[%c0_50, %c0_51, %c0_52] : memref<1x8x32xf32, #tpu.memory_space<vmem>>, vector<1x8x32xf32>
      %103 = vector.shape_cast %102 : vector<1x8x32xf32> to vector<8x32xf32>
      %104 = vector.shape_cast %101 : vector<8x32xf32> to vector<1x8x32xf32>
      tpu.vector_store %arg7[%c0_50, %c0_51, %c0_52], %104 {strides = array<i32>} : memref<1x8x32xf32, #tpu.memory_space<vmem>>, vector<1x8x32xf32>,
    } else {
    }
    %c0_i32_46 = arith.constant 0 : i32
    %96 = arith.cmpi sgt, %arg1, %c0_i32_46 : i32
    %97 = arith.extui %96 : i1 to i32
    %c0_i32_47 = arith.constant 0 : i32
    %98 = arith.cmpi ne, %97, %c0_i32_47 : i32
    scf.if %98 {
      %c0_48 = arith.constant 0 : index
      %c0_49 = arith.constant 0 : index
      %c0_50 = arith.constant 0 : index
      %99 = vector.load %arg7[%c0_48, %c0_49, %c0_50] : memref<1x8x32xf32, #tpu.memory_space<vmem>>, vector<1x8x32xf32>
      %100 = vector.shape_cast %99 : vector<1x8x32xf32> to vector<8x32xf32>
      %101 = arith.addf %100, %92 : vector<8x32xf32>
      %c0_51 = arith.constant 0 : index
      %c0_52 = arith.constant 0 : index
      %c0_53 = arith.constant 0 : index
      %102 = vector.load %arg7[%c0_51, %c0_52, %c0_53] : memref<1x8x32xf32, #tpu.memory_space<vmem>>, vector<1x8x32xf32>
      %103 = vector.shape_cast %102 : vector<1x8x32xf32> to vector<8x32xf32>
      %104 = vector.shape_cast %101 : vector<8x32xf32> to vector<1x8x32xf32>
      tpu.vector_store %arg7[%c0_51, %c0_52, %c0_53], %104 {strides = array<i32>} : memref<1x8x32xf32, #tpu.memory_space<vmem>>, vector<1x8x32xf32>,
    } else {
    }
    return
  }
  func.func @transform_0(%arg0: i32, %arg1: i32) -> (i32, i32, i32) {
    %c0_i32 = arith.constant 0 : i32
    %c0_i32_0 = arith.constant 0 : i32
    %c0_i32_1 = arith.constant 0 : i32
    return %arg0, %c0_i32, %c0_i32_0 : i32, i32, i32
  }
  func.func @transform_1(%arg0: i32, %arg1: i32) -> (i32, i32, i32) {
    %c0_i32 = arith.constant 0 : i32
    %c0_i32_0 = arith.constant 0 : i32
    %c0_i32_1 = arith.constant 0 : i32
    return %arg1, %c0_i32, %c0_i32_0 : i32, i32, i32
  }
  func.func @transform_2(%arg0: i32, %arg1: i32) -> (i32, i32, i32) {
    %c0_i32 = arith.constant 0 : i32
    %c0_i32_0 = arith.constant 0 : i32
    %c0_i32_1 = arith.constant 0 : i32
    return %arg1, %c0_i32, %c0_i32_0 : i32, i32, i32
  }
  func.func @transform_3(%arg0: i32, %arg1: i32) -> (i32, i32, i32) {
    %c0_i32 = arith.constant 0 : i32
    %c0_i32_0 = arith.constant 0 : i32
    %c0_i32_1 = arith.constant 0 : i32
    return %arg1, %c0_i32, %c0_i32_0 : i32, i32, i32
  }
  func.func @transform_4(%arg0: i32, %arg1: i32) -> (i32, i32) {
    %c0_i32 = arith.constant 0 : i32
    %c0_i32_0 = arith.constant 0 : i32
    %c0_i32_1 = arith.constant 0 : i32
    return %c0_i32, %c0_i32_0 : i32, i32
  }
  func.func @transform_5(%arg0: i32, %arg1: i32) -> (i32, i32, i32) {
    %c0_i32 = arith.constant 0 : i32
    %c0_i32_0 = arith.constant 0 : i32
    %c0_i32_1 = arith.constant 0 : i32
    return %arg0, %c0_i32, %c0_i32_0 : i32, i32, i32
  }
  func.func @transform_6(%arg0: i32, %arg1: i32) -> (i32, i32, i32, i32) {
    %c0_i32 = arith.constant 0 : i32
    %c0_i32_0 = arith.constant 0 : i32
    %c0_i32_1 = arith.constant 0 : i32
    return %arg0, %arg1, %c0_i32, %c0_i32_0 : i32, i32, i32, i32
  }
}

</mosaic_0001>

<bundles_post_ra>
// kernel: tpu_custom_call.1
= control target key start
LH: loop header
LB: loop body
LE: loop exit
PB: predicated region body
PF: predicated region fallthrough
CT: control target
= control target key end

     0   :  { %12 = vsyncpa [#allocation3], 0  ;;  %s2319_s0 = inlined_call_operand.hbm [shape: f32[2,8,32], index: 0, kind: input, shape index: {}]   ;;  %s2320_s1 = inlined_call_operand.hbm [shape: f32[1,32,96], index: 1, kind: input, shape index: {}]   ;;  %s2321_s2 = inlined_call_operand.vmem [shape: f32[1,1,96], index: 2, kind: input, shape index: {}]   ;;  %s2322_s3 = inlined_call_operand.hbm [shape: f32[1,32,32], index: 3, kind: input, shape index: {}]   ;;  %s2323_s4 = inlined_call_operand.vmem [shape: f32[1,32], index: 4, kind: input, shape index: {}]   ;;  %s2324_s5 = inlined_call_operand.hbm [shape: f32[2,8,32], index: 5, kind: output, shape index: {0}]   ;;  %s2325_s6 = inlined_call_operand.hbm [shape: f32[2,4,8,8], index: 6, kind: output, shape index: {1}]  }
   0x1   :  { %14 = vsyncpa [#allocation3 + $0x1], 0 }
   0x2   :  { %15 = vsyncpa [#allocation6], 0 }
   0x3   :  { %16 = vsyncpa [#allocation4], 0 }
   0x4   :  { %18 = vsyncpa [#allocation4 + $0x1], 0 }
   0x5   :  { %19 = vsyncpa [#allocation10], 0 }
   0x6   :  { %21 = vsyncpa [#allocation10 + $0x1], 0  ;;  %s1940_s21 = smov 0   ;;  %s1942_s22 = smov 0  }
   0x7   :  { %s1944_s23 = smov 0   ;;  %s1946_s24 = smov 0  }
   0x8   :  { %s1948_s25 = smov 0   ;;  %s1950_s26 = smov 0  }
   0x9 LB: > { %s1408_s27 = sadd.s32 4294967295, %s1878_s26   ;;  %s1409_s28 = sadd.s32 4294967294, %s1878_s26   ;;  %s1878_s26 = sphi %s1950_s26, %s27_s26   ;;  %s1874_s25 = sphi %s1948_s25, %s2350_s25   ;;  %s1870_s24 = sphi %s1946_s24, %s2349_s24   ;;  %s1866_s23 = sphi %s1944_s23, %s2348_s23   ;;  %s1862_s22 = sphi %s1942_s22, %s2347_s22   ;;  %s1858_s21 = sphi %s1940_s21, %s2346_s21  }
   0xa   : > { %p59_p0 = scmp.ne.s32.totalorder %s1862_s22, %s1858_s21  ;;  %p1974_p1 = scmp.eq.s32.totalorder %s1408_s27, 0 }
   0xb   : > { %p1978_p2 = scmp.eq.s32.totalorder %s1408_s27, 1  ;;  %p188_p3 = scmp.eq.s32.totalorder %s1409_s28, 1 }
   0xc   : > { %s2331_s29 = scalar_select %p1974_p1, 1, 0 }
   0xd   : > { %p1984_p4 = por %p1974_p1, %p59_p0  ;;  %p1410_p5 = scmp.ge.s32.totalorder %s1878_s26, 1 }
   0xe   : > { %p1989_p6 = por %p188_p3, %p59_p0  ;;  %p223_p7 = scmp.lt.s32.totalorder %s1878_s26, 3 }
   0xf   : > { %s2333_s7 = scalar_select %p1984_p4, 1, 0 }
  0x10   : > { %s2334_s8 = scalar_select %p1989_p6, 1, 0 }
  0x11   : > { %p1994_p8 = pnand %p1410_p5, %p223_p7  ;;  %s1880_s10 = smov [#allocation5]  }
  0x12   : > { %2335 = sst [smem:[#allocation15_spill]] %s2334_s8  ;;  %s238_s11 = sshll.u32 %s1880_s10, 4  ;;  %s1998_s11 = int_to_ptr.vmem [resolvable:$true] %s238_s11 }
  0x13   : > { %p1564_p9 = pneg %p1994_p8  ;;  %s1881_s13 = smov [#allocation7]  }
  0x14   : > { %s260_s14 = sshll.u32 %s1881_s13, 4  ;;  %s1674_s17 = scalar_lea.hbm %s2320_s1, 512  ;;  %s2009_s14 = int_to_ptr.vmem [resolvable:$true] %s260_s14 }
  0x15   : > { %p2005_p11 = pnand %p1564_p9, %p1974_p1  ;;  %p1675_p12 = scmp.ne.s32.totalorder %s2320_s1, %s1674_s17 }
  0x16   : > { %p1681_p5 = scmp.lt.u32.totalorder %s1674_s17, %s2320_s1 }
  0x17   : > { %p1676_p13 = pneg %p2005_p11 }
  0x19   : > { %p1677_p0 = pnand %p1676_p13, %p1675_p12 }
  0x1b   : > { %p1678_p3 = pneg %p1677_p0 }
  0x1d   : > { %p1683_p7 = pnand %p1681_p5, %p1678_p3 }
  0x1f   : > { %1686 = shalt.err (!%p1683_p7)
}
  0x20   : > { %s1687_s28 = scalar_lea.vmem %s1998_s11, 512  ;;  %p1695_p1 = scmp.lt.s32.totalorder %s1998_s11, %s1998_s11 }
  0x21   : > { %p1688_p9 = scmp.ne.s32.totalorder %s1998_s11, %s1687_s28  ;;  %p1696_p12 = scmp.lt.s32.totalorder %s1687_s28, %s1687_s28 }
  0x23   : > { %p1690_p10 = pnand %p1688_p9, %p1676_p13  ;;  %p1697_p0 = por %p1696_p12, %p1695_p1 }
  0x25   : > { %p1691_p6 = pneg %p1690_p10 }
  0x27   : > { %p1698_p4 = pnand %p1697_p0, %p1691_p6 }
  0x29   : > { %1701 = shalt.err (!%p1698_p4)
}
  0x2a   : > { %s1882_s10 = smov 128   ;;  %s1883_s13 = smov 8  }
  0x2b   : > { %1567 = dma.hbm_to_vmem [thread:$0]  (!%p2005_p11), %s2320_s1, 512, %s1998_s11, [#allocation6], %s1882_s10, %s1882_s10, %s1883_s13  }
  0x2c   : > { %s1702_s19 = scalar_lea.hbm %s2322_s3, 512 }
  0x2d   : > { %p1703_p1 = scmp.ne.s32.totalorder %s2322_s3, %s1702_s19  ;;  %p1709_p10 = scmp.lt.u32.totalorder %s1702_s19, %s2322_s3 }
  0x2f   : > { %p1705_p4 = pnand %p1703_p1, %p1676_p13 }
  0x31   : > { %p1706_p6 = pneg %p1705_p4 }
  0x33   : > { %p1711_p3 = pnand %p1709_p10, %p1706_p6 }
  0x35   : > { %1714 = shalt.err (!%p1711_p3)
}
  0x36   : > { %s1715_s11 = scalar_lea.vmem %s2009_s14, 512  ;;  %p1723_p12 = scmp.lt.s32.totalorder %s2009_s14, %s2009_s14 }
  0x37   : > { %p1716_p5 = scmp.ne.s32.totalorder %s2009_s14, %s1715_s11  ;;  %p1724_p0 = scmp.lt.s32.totalorder %s1715_s11, %s1715_s11 }
  0x39   : > { %p1718_p7 = pnand %p1716_p5, %p1676_p13  ;;  %p1725_p1 = por %p1724_p0, %p1723_p12 }
  0x3b   : > { %p1719_p9 = pneg %p1718_p7 }
  0x3d   : > { %p1726_p4 = pnand %p1725_p1, %p1719_p9 }
  0x3f   : > { %1729 = shalt.err (!%p1726_p4)
}
  0x40   : > { %1570 = dma.hbm_to_vmem [thread:$0]  (!%p2005_p11), %s2322_s3, 512, %s2009_s14, [#allocation6], %s1882_s10, %s1882_s10, %s1883_s13  }
  0x41   : > { %s39_s16 = sadd.s32 1, %s1874_s25  ;;  %s46_s17 = sadd.s32 1, %s1866_s23 }
  0x42   : > { %p41_p13 = scmp.ge.s32.totalorder %s39_s16, 2  ;;  %p53_p6 = scmp.ne.s32.totalorder %s1866_s23, %s1862_s22 }
  0x43   : > { %p54_p10 = scmp.eq.s32.totalorder %s1878_s26, 0  ;;  %p1584_p3 = scmp.lt.s32.totalorder %s1878_s26, 2 }
  0x44   : > { %s2352_s16 = smov (%p41_p13, %s39_s16), 0  ;;  %p2073_p7 = por %p1978_p2, %p53_p6 }
  0x45   : > { %p55_p5 = por %p54_p10, %p53_p6  ;;  %s43_s18 = ssub.s32 %s1874_s25, %s2352_s16 }
  0x46   : > { %s2338_s12 = scalar_select %p2073_p7, 1, 0 }
  0x47   : > { %s277_s19 = sand.u32 1, %s1866_s23   ;;  %p44_p9 = scmp.eq.s32.totalorder %s43_s18, 0 }
  0x48   : > { %s1415_s14 = sshll.u32 %s277_s19, 3  ;;  %s1416_s10 = sshll.u32 %s1874_s25, 7 }
  0x49   : > { %s2082_s13 = scalar_select %p44_p9, %s1866_s23, %s46_s17  }
  0x4a   : > { %s2087_s28 = scalar_lea.hbm %s2319_s0, %s1416_s10  ;;  %s281_s30 = scalar_lea.vmem [#allocation2], %s1415_s14 }
  0x4b   : > { %s288_s11 = sshll.u32 %s281_s30, 4  ;;  %p2091_p2 = pnand %p1584_p3, %p55_p5  ;;  %s2095_s11 = int_to_ptr.vmem [resolvable:$true] %s288_s11 }
  0x4c   : > { %s278_s15 = scalar_lea.sflag [#allocation3], %s277_s19  ;;  %s1730_s17 = scalar_lea.hbm %s2087_s28, 128 }
  0x4d   : > { %p1731_p11 = scmp.ne.s32.totalorder %s2087_s28, %s1730_s17  ;;  %p1732_p12 = pneg %p2091_p2 }
  0x4e   : > { %s1735_s10 = scalar_lea.hbm %s2319_s0, 256  ;;  %p1736_p4 = scmp.lt.u32.totalorder %s2087_s28, %s2319_s0 }
  0x4f   : > { %p1733_p0 = pnand %p1732_p12, %p1731_p11  ;;  %p1737_p13 = scmp.lt.u32.totalorder %s1735_s10, %s1730_s17 }
  0x50   : > { %p1739_p10 = scmp.lt.u32.totalorder %s1730_s17, %s2087_s28 }
  0x51   : > { %p1734_p1 = pneg %p1733_p0  ;;  %p1738_p6 = por %p1737_p13, %p1736_p4 }
  0x53   : > { %p1740_p3 = por %p1739_p10, %p1738_p6 }
  0x55   : > { %p1741_p5 = pnand %p1740_p3, %p1734_p1 }
  0x57   : > { %1744 = shalt.err (!%p1741_p5)
}
  0x58   : > { %s1745_s19 = scalar_lea.vmem %s2095_s11, 128  ;;  %s1884_s30 = smov [#allocation2]  }
  0x59   : > { %p1746_p9 = scmp.ne.s32.totalorder %s2095_s11, %s1745_s19  ;;  %s1750_s18 = sshll.u32 %s1884_s30, 4  ;;  %s1751_s18 = int_to_ptr.vmem [resolvable:$false] %s1750_s18 }
  0x5a   : > { %s1752_s14 = scalar_lea.vmem %s1751_s18, 256  ;;  %p1753_p7 = scmp.lt.s32.totalorder %s2095_s11, %s1751_s18 }
  0x5b   : > { %p1748_p11 = pnand %p1746_p9, %p1732_p12  ;;  %p1754_p4 = scmp.lt.s32.totalorder %s1752_s14, %s1745_s19 }
  0x5d   : > { %p1749_p0 = pneg %p1748_p11  ;;  %p1755_p13 = por %p1754_p4, %p1753_p7 }
  0x5f   : > { %p1756_p6 = pnand %p1755_p13, %p1749_p0 }
  0x61   : > { %1759 = shalt.err (!%p1756_p6)
}
  0x62   : > { %1574 = dma.hbm_to_vmem [thread:$0]  (!%p2091_p2), %s2087_s28, 128, %s2095_s11, %s278_s15  }
  0x63   : > { %297 = sbr.rel (%p1994_p8) target bundleno = 2117 (0x845), region = 40  ;;  %s2125_s17 = sand.u32 (!%p1994_p8), 1, %s1862_s22  }
  0x64   : > { %s1418_s10 = sshll.u32 (!%p1994_p8), %s2125_s17, 3  ;;  %s300_s20 = scalar_lea.sflag (!%p1994_p8), [#allocation3], %s2125_s17 }
  0x65   : > { %s303_s27 = scalar_lea.vmem (!%p1994_p8), [#allocation2], %s1418_s10  ;;  %p2340_p7 = scmp.ne.s32.totalorder (!%p1994_p8), %s2333_s7, 0 }
  0x6a   : > { %1841 = dma.done.wait (%p2340_p7), %s300_s20, 128  }
  0x6b   : > { %1843 = vsyncadd (%p2340_p7), %s300_s20, 4294967168  ;;  %p2341_p2 = scmp.ne.s32.totalorder %s2331_s29, 0 }
  0x6d   : > { %1845 = dma.done.wait (%p2341_p2), [#allocation6], 1024  }
  0x6e   : > { %1847 = vsyncadd (%p2341_p2), [#allocation6], 4294966272  ;;  %v1885_v0 = vmov 0.0|0.0   ;;  %vm1886_vm0 = vmmov 0   ;;  %v1887_v1 = vmov 0.0   ;;  %v353_v2 = vld [vmem:[#allocation5] sm:$0xff] }
  0x6f   : > { %1538 = vmatprep.subr.bf16.mxu0 %v1885_v0  ;;  %1484 = vmatprep.mubr.msk.f32.mxu0 %vm1886_vm0, %v1887_v1  ;;  %v354_v3 = vld [vmem:[#allocation5 + $0x8] sm:$0xff]  ;;  %v355_v4 = vld [vmem:[#allocation5 + $0x10] sm:$0xff]  ;;  %v356_v6 = vld [vmem:[#allocation5 + $0x18] sm:$0xff]  ;;  %vm364_vm1 = vcmask 261120   ;;  %s1888_s9 = smov 64   ;;  %s1889_s28 = smov 96  }
  0x70   : > { %1487 = vmatprep.subr.mxu1 %v1887_v1  ;;  %1489 = vmatprep.mubr.msk.f32.mxu1 %vm1886_vm0, %v1887_v1  ;;  %v1539_v5 = vpack.c.bf16 %v354_v3, %v353_v2  ;;  %v1542_v7 = vpack.c.bf16 %v356_v6, %v355_v4  ;;  %v352_v8 = vld [vmem:[%s303_s27] sm:$0xff]  ;;  %s1890_s11 = smov 88   ;;  %s1891_s8 = smov 120   ;;  %vm441_vm2 = vcmask 64512   ;;  %vm1122_vm3 = vcmask 130048  }
  0x71   : > { %v1423_v9 = vld [vmem:[%s2321_s2] ss:$0 sm:$0xff]  ;;  %s1892_s15 = smov 80   ;;  %s1893_s19 = smov 72   ;;  %vm1124_vm4 = vcmask 195584  }
  0x72   : > { %1540 = vmatpush3.bf16.msra.mxu0 %v1539_v5  ;;  %s1894_s30 = smov 112   ;;  %s1895_s18 = smov 104  }
  0x73   : > { %1541 = vmatprep.subr.bf16.mxu0 %v1885_v0  ;;  %s1422_s14 = sshll.u32 %s2125_s17, 5  ;;  %s1896_s27 = smov 56  }
  0x74   : > { %s2183_s20 = scalar_lea.vmem [#allocation9], %s1422_s14  ;;  %s1897_s29 = smov 48  }
  0x75   : > { %s1898_s7 = smov 40   ;;  %s1229_s14 = scalar_lea.sflag [#allocation10], %s2125_s17 }
  0x76   : > { %1543 = vmatpush3.bf16.msra.mxu0 %v1542_v7  ;;  %p2342_p12 = scmp.ne.s32.totalorder %s2338_s12, 0 }
  0x77   : > { %1507 = vmatprep.subr.mxu0 %v1887_v1 }
  0x79   : > { %1485 = vmatmul.mubr.msk.f32.vlgmr.msra.gmra.mrb[0].mxu0 %vm364_vm1, %v352_v8 }
  0x7a   : > { %1509 = vmatprep.mubr.msk.f32.mxu0 %vm1886_vm0, %v1887_v1 }
 0x14c   : > { %v434_v10 = vpop.f32.mrb[0].mxu0 }
 0x14d   : > { %v2153_v11 = vadd.f32 %v1423_v9, %v434_v10  ;;  %v1486_v12 = vpop.f32.mrb[1].mxu0 }
 0x14e   : > { %v1126_v12 = vld [vmem:[#allocation7] sm:$0xff] }
 0x14f   : > { %529 = vrot.lane.b32.xlu1 %v2153_v11, %s1888_s9  ;;  %439 = vrot.lane.b32.xlu0 %v2153_v11, %s1889_s28  ;;  %s1899_s9 = smov 8   ;;  %s1900_s28 = smov 16  }
 0x153   : > { %607 = vrot.lane.b32.xlu1 %v2153_v11, %s1890_s11  ;;  %s1901_s11 = smov 24  }
 0x157   : > { %605 = vrot.lane.b32.xlu1 %v2153_v11, %s1891_s8  ;;  %s1449_s8 = sshll.u32 %s1870_s24, 9 }
 0x15b   : > { %775 = vrot.lane.b32.xlu1 %v2153_v11, %s1892_s15  ;;  %s1257_s15 = sshll.u32 %s2183_s20, 4  ;;  %s2233_s15 = int_to_ptr.vmem [resolvable:$true] %s1257_s15 }
 0x1c1   : > { %v530_v13 = vpop.permute.xlu1 %529  ;;  %v440_v14 = vpop.permute.xlu0 %439 }
 0x1c2   : > { %1488 = vmatpush3.xpose.msk.msra.mxu1 %vm441_vm2, %v440_v14 }
 0x1c3   : > { %1492 = vmatprep.subr.mxu1 %v1887_v1 }
 0x1c5   : > { %v608_v15 = vpop.permute.xlu1 %607  ;;  %1490 = vmatmul.mubr.msk.f32.vlgmr.msra.gmra.mrb[0].mxu1 %vm441_vm2, %v2153_v11 }
 0x1c6   : > { %1493 = vmatpush3.msra.mxu1 %v530_v13  ;;  %1494 = vmatprep.mubr.msk.f32.mxu1 %vm1886_vm0, %v1887_v1  ;;  %v1127_v13 = vld [vmem:[#allocation7 + $0x8] sm:$0xff] }
 0x1c7   : > { %1497 = vmatprep.subr.mxu1 %v1887_v1  ;;  %v1545_v14 = vpack.c.bf16 %v1127_v13, %v1126_v12 }
 0x1c9   : > { %v606_v16 = vpop.permute.xlu1 %605 }
 0x1cd   : > { %v776_v17 = vpop.permute.xlu1 %775 }
 0x1ce   : > { %1508 = vmatpush3.xpose.msk.msra.mxu0 %vm441_vm2, %v776_v17 }
 0x1cf   : > { %1517 = vmatprep.subr.mxu0 %v1887_v1 }
 0x298   : > { %v512_v18 = vpop.f32.mrb[0].mxu1 }
 0x299   : > { %v516_v19 = vmul.f32 0.35355338, %v512_v18  ;;  %v1491_v20 = vpop.f32.mrb[1].mxu1 }
 0x29b   : > { %v517_v21 = vsel %vm441_vm2, %v516_v19, -inf }
 0x29c   : > { %518 = vmax.xlane.f32.xlu0 %v517_v21 }
 0x2b2   : > { %943 = vrot.lane.b32.xlu0 %v2153_v11, %s1893_s19 }
 0x329   : > { %v519_v22 = vpop.xlane.xlu0 %518 }
 0x32a   : > { %v520_v23 = vsub.f32 %v516_v19, %v519_v22 }
 0x32c   : > { %v521_v24 = vmul.f32 1.442695, %v520_v23 }
 0x32d   : > { %v944_v29 = vpop.permute.xlu0 %943 }
 0x32e   : > { %1658 = vpow2.f32 %v521_v24 }
 0x338   : > { %v1659_v25 = vpop.eup %1658 }
 0x339   : > { %v523_v26 = vsel %vm441_vm2, %v1659_v25, 0.0 }
 0x33a   : > { %524 = vadd.xlane.f32.xlu1 %v523_v26 }
 0x34b   : > { %773 = vrot.lane.b32.xlu1 %v2153_v11, %s1894_s30 }
 0x34f   : > { %941 = vrot.lane.b32.xlu1 %v2153_v11, %s1895_s18  ;;  %s2231_s18 = scalar_lea.hbm %s2325_s6, %s1449_s8 }
 0x3c7   : > { %v525_v27 = vpop.xlane.xlu1 %524 }
 0x3c8   : > { %1660 = vrcp.f32 %v525_v27 }
 0x3cb   : > { %v774_v28 = vpop.permute.xlu1 %773 }
 0x3cc   : > { %1510 = vmatmul.mubr.msk.f32.vlgmr.msra.gmra.mrb[2].mxu0 %vm441_vm2, %v774_v28 }
 0x3cd   : > { %1518 = vmatpush3.xpose.msk.msra.mxu0 %vm441_vm2, %v944_v29  ;;  %1519 = vmatprep.mubr.msk.f32.mxu0 %vm1886_vm0, %v1887_v1 }
 0x3ce   : > { %1544 = vmatprep.subr.bf16.mxu0 %v1885_v0 }
 0x3cf   : > { %v942_v30 = vpop.permute.xlu1 %941 }
 0x3d0   : > { %1520 = vmatmul.mubr.msk.f32.vlgmr.msra.gmra.mrb[4].mxu0 %vm441_vm2, %v942_v30 }
 0x3d1   : > { %1535 = vmatprep.mubr.msk.f32.mxu0 %vm1886_vm0, %v1887_v1  ;;  %1546 = vmatpush3.bf16.msra.mxu0 %v1545_v14 }
 0x3d2   : > { %v1661_v31 = vpop.eup %1660  ;;  %1547 = vmatprep.subr.bf16.mxu0 %v1885_v0 }
 0x3d3   : > { %v527_v32 = vmul.f32 %v1661_v31, %v1659_v25 }
 0x3d5   : > { %528 = vst.msk [vmem:[%s2183_s20] sm:$0xff] %vm441_vm2, %v527_v32  ;;  %1495 = vmatmul.mubr.msk.f32.vlgmr.msra.gmra.mrb[2].mxu1 %vm441_vm2, %v527_v32 }
 0x3d6   : > { %1498 = vmatpush3.xpose.msk.msra.mxu1 %vm441_vm2, %v608_v15  ;;  %1499 = vmatprep.mubr.msk.f32.mxu1 %vm1886_vm0, %v1887_v1  ;;  %v1128_v15 = vld [vmem:[#allocation7 + $0x10] sm:$0xff] }
 0x3d7   : > { %1502 = vmatprep.subr.mxu1 %v1887_v1 }
 0x3d9   : > { %1500 = vmatmul.mubr.msk.f32.vlgmr.msra.gmra.mrb[4].mxu1 %vm441_vm2, %v606_v16  ;;  %v1129_v16 = vld [vmem:[#allocation7 + $0x18] sm:$0xff] }
 0x3da   : > { %1504 = vmatprep.mubr.msk.f32.mxu1 %vm1886_vm0, %v1887_v1  ;;  %v1548_v17 = vpack.c.bf16 %v1129_v16, %v1128_v15 }
 0x3dc   : > { %1549 = vmatpush3.bf16.msra.mxu0 %v1548_v17 }
 0x49f   : > { %v847_v33 = vpop.f32.mrb[2].mxu0 }
 0x4a0   : > { %v851_v34 = vmul.f32 0.35355338, %v847_v33  ;;  %v1511_v35 = vpop.f32.mrb[3].mxu0 }
 0x4a2   : > { %v852_v36 = vsel %vm441_vm2, %v851_v34, -inf }
 0x4a3   : > { %853 = vmax.xlane.f32.xlu0 %v852_v36  ;;  %v1015_v37 = vpop.f32.mrb[4].mxu0 }
 0x4a4   : > { %v1521_v38 = vpop.f32.mrb[5].mxu0  ;;  %v1019_v44 = vmul.f32 0.35355338, %v1015_v37 }
 0x4a6   : > { %v1020_v46 = vsel %vm441_vm2, %v1019_v44, -inf }
 0x4a8   : > { %v2196_v39 = vpop.f32.mrb[2].mxu1 }
 0x4a9   : > { %v1496_v40 = vpop.f32.mrb[3].mxu1 }
 0x4ac   : > { %v679_v41 = vpop.f32.mrb[4].mxu1 }
 0x4ad   : > { %v683_v42 = vmul.f32 0.35355338, %v679_v41  ;;  %v1501_v43 = vpop.f32.mrb[5].mxu1 }
 0x4af   : > { %v684_v45 = vsel %vm441_vm2, %v683_v42, -inf }
 0x4b0   : > { %685 = vmax.xlane.f32.xlu1 %v684_v45 }
 0x4b4   : > { %1021 = vmax.xlane.f32.xlu1 %v1020_v46 }
 0x530   : > { %v854_v47 = vpop.xlane.xlu0 %853 }
 0x531   : > { %v855_v48 = vsub.f32 %v851_v34, %v854_v47 }
 0x533   : > { %v856_v49 = vmul.f32 1.442695, %v855_v48 }
 0x535   : > { %1662 = vpow2.f32 %v856_v49 }
 0x53d   : > { %v686_v50 = vpop.xlane.xlu1 %685 }
 0x53e   : > { %v687_v58 = vsub.f32 %v683_v42, %v686_v50 }
 0x53f   : > { %v1663_v51 = vpop.eup %1662 }
 0x540   : > { %v858_v52 = vsel %vm441_vm2, %v1663_v51, 0.0  ;;  %v688_v59 = vmul.f32 1.442695, %v687_v58 }
 0x541   : > { %859 = vadd.xlane.f32.xlu1 %v858_v52  ;;  %v1022_v53 = vpop.xlane.xlu1 %1021 }
 0x542   : > { %v1023_v54 = vsub.f32 %v1019_v44, %v1022_v53 }
 0x544   : > { %v1024_v55 = vmul.f32 1.442695, %v1023_v54 }
 0x546   : > { %1664 = vpow2.f32 %v1024_v55 }
 0x547   : > { %1666 = vpow2.f32 %v688_v59 }
 0x550   : > { %v1665_v56 = vpop.eup %1664 }
 0x551   : > { %v1026_v57 = vsel %vm441_vm2, %v1665_v56, 0.0  ;;  %v1667_v60 = vpop.eup %1666 }
 0x552   : > { %697 = vrot.lane.b32.xlu1 %v2153_v11, %s1896_s27  ;;  %1027 = vadd.xlane.f32.xlu0 %v1026_v57  ;;  %v690_v61 = vsel %vm441_vm2, %v1667_v60, 0.0  ;;  %s1760_s27 = scalar_lea.vmem %s2233_s15, 512 }
 0x553   : > { %p1761_p8 = scmp.ne.s32.totalorder %s2233_s15, %s1760_s27 }
 0x555   : > { %p1762_p1 = pnand %p1761_p8, %p2342_p12 }
 0x557   : > { %p1763_p10 = pneg %p1762_p1 }
 0x568   : > { %865 = vrot.lane.b32.xlu0 %v2153_v11, %s1897_s29  ;;  %s1902_s29 = smov [#allocation9]  }
 0x576   : > { %691 = vadd.xlane.f32.xlu1 %v690_v61 }
 0x587   : > { %1033 = vrot.lane.b32.xlu1 %v2153_v11, %s1898_s7  ;;  %s1764_s7 = sshll.u32 %s1902_s29, 4  ;;  %s1765_s7 = int_to_ptr.vmem [resolvable:$false] %s1764_s7 }
 0x588   : > { %p1767_p3 = scmp.lt.s32.totalorder %s2233_s15, %s1765_s7 }
 0x5ce   : > { %v860_v62 = vpop.xlane.xlu1 %859 }
 0x5cf   : > { %1668 = vrcp.f32 %v860_v62 }
 0x5d2   : > { %v698_v63 = vpop.permute.xlu1 %697 }
 0x5d3   : > { %1503 = vmatpush3.msra.mxu1 %v698_v63 }
 0x5d4   : > { %1512 = vmatprep.subr.mxu1 %v1887_v1 }
 0x5d9   : > { %v1669_v2 = vpop.eup %1668 }
 0x5da   : > { %v862_v3 = vmul.f32 %v1669_v2, %v1663_v51 }
 0x5dc   : > { %1434 = vst.msk [vmem:[%s2183_s20 + $0x10] sm:$0xff] %vm441_vm2, %v862_v3 }
 0x5df   : > { %v1028_v4 = vpop.xlane.xlu0 %1027 }
 0x5e0   : > { %1670 = vrcp.f32 %v1028_v4 }
 0x5e3   : > { %v866_v10 = vpop.permute.xlu0 %865 }
 0x5ea   : > { %v1671_v5 = vpop.eup %1670 }
 0x5eb   : > { %v1030_v6 = vmul.f32 %v1671_v5, %v1665_v56 }
 0x5ed   : > { %1438 = vst.msk [vmem:[%s2183_s20 + $0x18] sm:$0xff] %vm441_vm2, %v1030_v6 }
 0x603   : > { %v692_v7 = vpop.xlane.xlu1 %691 }
 0x604   : > { %1672 = vrcp.f32 %v692_v7 }
 0x607   : > { %v1034_v11 = vpop.permute.xlu1 %1033 }
 0x60e   : > { %v1673_v8 = vpop.eup %1672 }
 0x60f   : > { %v694_v9 = vmul.f32 %v1673_v8, %v1667_v60 }
 0x611   : > { %1430 = vst.msk [vmem:[%s2183_s20 + $0x8] sm:$0xff] %vm441_vm2, %v694_v9  ;;  %1505 = vmatmul.mubr.msk.f32.vlgmr.msra.gmra.mrb[6].mxu1 %vm441_vm2, %v694_v9  ;;  %s1766_s20 = scalar_lea.vmem %s1765_s7, 1024 }
 0x612   : > { %1513 = vmatpush3.msra.mxu1 %v866_v10  ;;  %1514 = vmatprep.mubr.msk.f32.mxu1 %vm1886_vm0, %v1887_v1  ;;  %p1768_p5 = scmp.lt.s32.totalorder %s1766_s20, %s1760_s27 }
 0x613   : > { %1522 = vmatprep.subr.mxu1 %v1887_v1 }
 0x614   : > { %p1769_p9 = por %p1768_p5, %p1767_p3 }
 0x615   : > { %1515 = vmatmul.mubr.msk.f32.vlgmr.msra.gmra.mrb[8].mxu1 %vm441_vm2, %v862_v3 }
 0x616   : > { %1523 = vmatpush3.msra.mxu1 %v1034_v11  ;;  %1524 = vmatprep.mubr.msk.f32.mxu1 %vm1886_vm0, %v1887_v1  ;;  %p1770_p11 = pnand %p1769_p9, %p1763_p10 }
 0x619   : > { %1525 = vmatmul.mubr.msk.f32.vlgmr.msra.gmra.mrb[10].mxu1 %vm441_vm2, %v1030_v6 }
 0x6e4   : > { %v769_v18 = vpop.f32.mrb[6].mxu1 }
 0x6e5   : > { %1110 = vrot.lane.b32.xlu1 %v769_v18, %s1899_s9  ;;  %v1506_v19 = vpop.f32.mrb[7].mxu1 }
 0x6e8   : > { %v937_v20 = vpop.f32.mrb[8].mxu1 }
 0x6e9   : > { %1114 = vrot.lane.b32.xlu0 %v937_v20, %s1900_s28  ;;  %v1516_v1 = vpop.f32.mrb[9].mxu1 }
 0x6ec   : > { %v1105_v21 = vpop.f32.mrb[10].mxu1 }
 0x6ed   : > { %1118 = vrot.lane.b32.xlu1 %v1105_v21, %s1901_s11  ;;  %v1526_v0 = vpop.f32.mrb[11].mxu1 }
 0x757   : > { %v1111_v22 = vpop.permute.xlu1 %1110 }
 0x758   : > { %v1121_v24 = vsel %vm441_vm2, %v2196_v39, %v1111_v22 }
 0x75b   : > { %v1115_v23 = vpop.permute.xlu0 %1114 }
 0x75c   : > { %v1123_v25 = vsel %vm1122_vm3, %v1121_v24, %v1115_v23 }
 0x75f   : > { %v1119_v26 = vpop.permute.xlu1 %1118 }
 0x760   : > { %v1125_v27 = vsel %vm1124_vm4, %v1123_v25, %v1119_v26 }
 0x761   : > { %1536 = vmatmul.mubr.msk.f32.vlgmr.msra.gmra.mrb[6].mxu0 %vm364_vm1, %v1125_v27 }
 0x762   : > { %1773 = shalt.err (!%p1770_p11)
}
 0x763   : > { %s1774_s28 = scalar_lea.hbm %s2231_s18, 512  ;;  %s1778_s19 = scalar_lea.hbm %s2325_s6, 1024 }
 0x764   : > { %p1775_p0 = scmp.ne.s32.totalorder %s2231_s18, %s1774_s28  ;;  %p1779_p6 = scmp.lt.u32.totalorder %s2231_s18, %s2325_s6 }
 0x765   : > { %p1780_p7 = scmp.lt.u32.totalorder %s1778_s19, %s1774_s28  ;;  %p1782_p8 = scmp.lt.u32.totalorder %s1774_s28, %s2231_s18 }
 0x766   : > { %p1776_p4 = pnand %p1775_p0, %p2342_p12 }
 0x767   : > { %p1781_p2 = por %p1780_p7, %p1779_p6 }
 0x768   : > { %p1777_p13 = pneg %p1776_p4 }
 0x769   : > { %p1783_p1 = por %p1782_p8, %p1781_p2 }
 0x76b   : > { %p1784_p10 = pnand %p1783_p1, %p1777_p13 }
 0x76d   : > { %1787 = shalt.err (!%p1784_p10)
}
 0x76e   : > { %s1903_s27 = smov 128   ;;  %v1441_v28 = vld [vmem:[%s2323_s4] ss:$0 sm:$0xff]  ;;  %s1444_s28 = sshll.u32 %s1870_s24, 7 }
 0x76f   : > { %1561 = dma.vmem_to_hbm [thread:$0]  (%p2342_p12), %s2233_s15, 512, %s2231_s18, %s1229_s14, %s1903_s27, %s1903_s27, %s1899_s9  }
 0x770   : > { %s340_s11 = scalar_lea.vmem [#allocation8], %s1418_s10  ;;  %s2269_s29 = scalar_lea.hbm %s2324_s5, %s1444_s28 }
 0x771   : > { %s1242_s8 = sshll.u32 %s340_s11, 4  ;;  %s1224_s9 = scalar_lea.sflag [#allocation4], %s2125_s17  ;;  %s2271_s8 = int_to_ptr.vmem [resolvable:$true] %s1242_s8 }
 0x772   : > { %s1788_s24 = scalar_lea.vmem %s2271_s8, 128  ;;  %s1904_s10 = smov [#allocation8]  }
 0x773   : > { %p1789_p3 = scmp.ne.s32.totalorder %s2271_s8, %s1788_s24  ;;  %s1792_s15 = sshll.u32 %s1904_s10, 4  ;;  %s1793_s15 = int_to_ptr.vmem [resolvable:$false] %s1792_s15 }
 0x774   : > { %s1794_s18 = scalar_lea.vmem %s1793_s15, 256  ;;  %p1795_p11 = scmp.lt.s32.totalorder %s2271_s8, %s1793_s15 }
 0x775   : > { %p1790_p5 = pnand %p1789_p3, %p2342_p12  ;;  %p1796_p0 = scmp.lt.s32.totalorder %s1794_s18, %s1788_s24 }
 0x777   : > { %p1791_p9 = pneg %p1790_p5  ;;  %p1797_p4 = por %p1796_p0, %p1795_p11 }
 0x779   : > { %p1798_p13 = pnand %p1797_p4, %p1791_p9 }
 0x834   : > { %v1199_v29 = vpop.f32.mrb[6].mxu0 }
 0x835   : > { %v1214_v30 = vadd.f32 %v1441_v28, %v1199_v29  ;;  %v1537_v31 = vpop.f32.mrb[7].mxu0 }
 0x837   : > { %1215 = vst.msk [vmem:[%s340_s11] sm:$0xff] %vm364_vm1, %v1214_v30 }
 0x838   : > { %1801 = shalt.err (!%p1798_p13)
}
 0x839   : > { %s1802_s17 = scalar_lea.hbm %s2269_s29, 128  ;;  %s1806_s7 = scalar_lea.hbm %s2324_s5, 256 }
 0x83a   : > { %p1803_p6 = scmp.ne.s32.totalorder %s2269_s29, %s1802_s17  ;;  %p1807_p8 = scmp.lt.u32.totalorder %s2269_s29, %s2324_s5 }
 0x83b   : > { %p1808_p1 = scmp.lt.u32.totalorder %s1806_s7, %s1802_s17  ;;  %p1810_p3 = scmp.lt.u32.totalorder %s1802_s17, %s2269_s29 }
 0x83c   : > { %p1804_p7 = pnand %p1803_p6, %p2342_p12 }
 0x83d   : > { %p1809_p10 = por %p1808_p1, %p1807_p8 }
 0x83e   : > { %p1805_p2 = pneg %p1804_p7 }
 0x83f   : > { %p1811_p5 = por %p1810_p3, %p1809_p10 }
 0x841   : > { %p1812_p9 = pnand %p1811_p5, %p1805_p2 }
 0x843   : > { %1815 = shalt.err (!%p1812_p9)
}
 0x844   : > { %1560 = dma.vmem_to_hbm [thread:$0]  (%p2342_p12), %s2271_s8, 128, %s2269_s29, %s1224_s9  }
 0x845 PF: > { %s2343_s11 = sld [smem:[#allocation15_spill]]  ;;  %s1272_s19 = sand.u32 1, %s1858_s21  }
 0x846   : > { %p2345_p0 = scmp.ge.s32.totalorder %s1878_s26, 2  ;;  %s1273_s30 = scalar_lea.sflag [#allocation4], %s1272_s19 }
 0x84b   : > { %p2344_p11 = scmp.ne.s32.totalorder %s2343_s11, 0 }
 0x84d   : > { %p1576_p4 = pnand %p2345_p0, %p2344_p11 }
 0x84f   : > { %1849 = dma.done.wait (!%p1576_p4), %s1273_s30, 128  }
 0x850   : > { %1851 = vsyncadd (!%p1576_p4), %s1273_s30, 4294967168  ;;  %s1282_s24 = scalar_lea.sflag [#allocation10], %s1272_s19 }
 0x851   : > { %1853 = dma.done.wait (!%p1576_p4), %s1282_s24, 512  }
 0x852   : > { %1855 = vsyncadd (!%p1576_p4), %s1282_s24, 4294966784  ;;  %s27_s26 = sadd.s32 1, %s1878_s26   ;;  %s2346_s21 = smov %s1862_s22 }
 0x853   : > { %p24_p13 = scmp.ge.s32.totalorder %s27_s26, 4   ;;  %s2347_s22 = smov %s1866_s23 }
 0x854   : > { %s2348_s23 = smov %s2082_s13  ;;  %s2349_s24 = smov %s1874_s25 }
 0x855   : > { %s2350_s25 = smov %s2352_s16  ;;  %26 = sbr.rel (!%p24_p13) target bundleno = 9 (0x9), region = 126 }
 0x85c   :  { %1287 = vsyncpa [#allocation3], 1 }
 0x85d   :  { %1289 = vsyncpa [#allocation3 + $0x1], 1 }
 0x85e   :  { %1290 = vsyncpa [#allocation6], 1 }
 0x85f   :  { %1291 = vsyncpa [#allocation4], 1 }
 0x860   :  { %1293 = vsyncpa [#allocation4 + $0x1], 1 }
 0x861   :  { %1294 = vsyncpa [#allocation10], 1 }
 0x862   :  { %1296 = vsyncpa [#allocation10 + $0x1], 1 }

</bundles_post_ra>
